<compile_context>
chip_gen: v7x
topology: tpu7x:2x2x1
jax: 0.10.0
libtpu: 0.0.40
codegen_flags: <defaults>
</compile_context>

<pallas_src>
import jax
import jax.numpy as jnp
from jax import lax
from jax.experimental import pallas as pl
from jax.experimental.pallas import tpu as pltpu


def _kron_induction_kernel(tgt_ref, k_ref, m_ref, e_ref, b_ref, out_ref):
    # tgt_ref : (S, LP)          f32  per-lane-group gather target = tok + g*V
    # k_ref   : (S, S)           f32  causally-masked Kronecker mixing matrix
    # m_ref   : (LANE_W, LANE_W) f32  block-diag fused table kron(I_LP, E@W^T)
    # e_ref   : (LP, LANE_W)     f32  lane-expansion matrix (group -> V lanes)
    # b_ref   : (1, LANE_W)      f32  lane-tiled output bias
    # out_ref : (S, LANE_W)      f32  packed logits for LP batch elements
    S, lane_w = out_ref.shape

    # Expand the LP per-group targets across their V-wide lane blocks (MXU;
    # exact for small-integer values).
    tgt_exp = jnp.dot(tgt_ref[...], e_ref[...],
                      preferred_element_type=jnp.float32)        # (S, LANE_W)

    # One-hot over the packed vocab lanes: onehot[t, g*V + v] = (tok[g,t]==v).
    lane = lax.broadcasted_iota(jnp.int32, (S, lane_w), 1).astype(jnp.float32)
    onehot = jnp.where(jnp.abs(lane - tgt_exp) < 0.5, 1.0, 0.0)  # (S, LANE_W)
    onehot = onehot.astype(jnp.float32)

    # Fused embedding gather + output projection: y[t, g*V+w] = M[tok[g,t], w]
    y = jnp.dot(onehot, m_ref[...],
                preferred_element_type=jnp.float32)              # (S, LANE_W)

    # Causal Kronecker sequence mixing: logits[t] = sum_s K[s, t] * y[s] + b.
    logits = lax.dot_general(
        k_ref[...], y,
        dimension_numbers=(((0,), (0,)), ((), ())),
        preferred_element_type=jnp.float32,
    ) + b_ref[...]

    out_ref[...] = logits.astype(out_ref.dtype)


def kron_model_induction_forward(tokens, embedding, u, v, w_out, b_out):
    """Pallas implementation of KronModelInduction.forward.

    tokens    : (B, S) int32
    embedding : (vocab+3, D) f32
    u, v      : (F, F) f32 with F*F == S
    w_out     : (vocab+3, D) f32   (torch Linear weight layout)
    b_out     : (vocab+3,)  f32
    returns (logits (B, S, vocab+3), kron_matrix (S, S))
    """
    B, S = tokens.shape
    V = w_out.shape[0]
    assert embedding.shape[0] == V, "module uses vocab+3 for both tables"

    # Lane-packing factor: LP batch elements share one 128-lane output tile.
    LP = max(1, 128 // V)
    lane_w = ((LP * V + 127) // 128) * 128
    B_pad = ((B + LP - 1) // LP) * LP
    G = B_pad // LP
    pad_lanes = lane_w - LP * V

    # ---- glue (plain JAX, all tiny) -------------------------------------
    kron_masked = jnp.kron(u, v) * jnp.tril(
        jnp.ones((S, S), jnp.float32))                            # (S, S)

    # Fused embedding->logits table:  M = E @ W^T   (V, V)
    m_fused = jnp.dot(embedding.astype(jnp.float32),
                      w_out.T.astype(jnp.float32))                # (V, V)
    m_bd = jnp.kron(jnp.eye(LP, dtype=jnp.float32), m_fused)      # block diag
    m_bd = jnp.pad(m_bd, ((0, pad_lanes), (0, pad_lanes)))        # (lane_w,)*2

    b_tiled = jnp.pad(jnp.tile(b_out.astype(jnp.float32), LP),
                      (0, pad_lanes)).reshape(1, lane_w)          # (1, lane_w)

    cols = jnp.arange(lane_w)
    expand = ((cols[None, :] // V == jnp.arange(LP)[:, None])
              & (cols[None, :] < LP * V)).astype(jnp.float32)     # (LP, lane_w)

    # Tokens, rearranged per lane-group and offset into packed-lane indices.
    tok_pad = jnp.pad(tokens, ((0, B_pad - B), (0, 0)))           # (B_pad, S)
    tok_t = tok_pad.reshape(G, LP, S).transpose(0, 2, 1)          # (G, S, LP)
    target = (tok_t + (jnp.arange(LP) * V)[None, None, :]).astype(jnp.float32)

    # ---- Pallas call ------------------------------------------------------
    grid_spec = pltpu.PrefetchScalarGridSpec(
        num_scalar_prefetch=0,
        grid=(G,),
        in_specs=[
            # per-group gather targets; leading dim squeezed -> (S, LP)
            pl.BlockSpec((pl.Squeezed(), S, LP), lambda g: (g, 0, 0)),
            pl.BlockSpec((S, S), lambda g: (0, 0)),            # masked kron
            pl.BlockSpec((lane_w, lane_w), lambda g: (0, 0)),  # block-diag M
            pl.BlockSpec((LP, lane_w), lambda g: (0, 0)),      # expand matrix
            pl.BlockSpec((1, lane_w), lambda g: (0, 0)),       # tiled bias
        ],
        out_specs=pl.BlockSpec((pl.Squeezed(), S, lane_w),
                               lambda g: (g, 0, 0)),           # (S, lane_w)
    )

    packed = pl.pallas_call(
        _kron_induction_kernel,
        out_shape=jax.ShapeDtypeStruct((G, S, lane_w), jnp.float32),
        grid_spec=grid_spec,
        compiler_params=pltpu.CompilerParams(
            # Independent groups of LP batch elements: shards across v7x's
            # two TensorCores once G >= 2; no-op on v5e/v6e.
            dimension_semantics=("parallel",),
        ),
    )(target, kron_masked, m_bd, expand, b_tiled)

    # Un-interleave the packed lanes back into (B, S, V).
    logits = (packed[:, :, :LP * V]
              .reshape(G, S, LP, V)
              .transpose(0, 2, 1, 3)
              .reshape(B_pad, S, V)[:B])
    return logits, kron_masked


def _reference_forward(tokens, embedding, u, v, w_out, b_out):
    """Pure-JAX reference matching the PyTorch module exactly."""
    S = tokens.shape[1]
    x_emb = jnp.take(embedding, tokens, axis=0)           # (B, S, D)
    x_emb_t = jnp.swapaxes(x_emb, 1, 2)                   # (B, D, S)
    kron = jnp.kron(u, v) * jnp.tril(jnp.ones((S, S), jnp.float32))
    mixed = jnp.matmul(x_emb_t, kron)                     # (B, D, S)
    mixed = jnp.swapaxes(mixed, 1, 2)                     # (B, S, D)
    logits = jnp.matmul(mixed, w_out.T) + b_out
    return logits, kron


if __name__ == "__main__":
    # Small shapes consistent with the module: seq_len = factor_dim ** 2.
    FACTOR_DIM = 8
    SEQ_LEN = FACTOR_DIM * FACTOR_DIM   # 64
    D_MODEL = 32
    VOCAB_SIZE = 13                     # vocab_size + 3 = 16
    V_OUT = VOCAB_SIZE + 3
    BATCH = 2

    key = jax.random.PRNGKey(0)
    k_emb, k_u, k_v, k_w, k_b, k_tok = jax.random.split(key, 6)

    # Deterministic parameter init (shapes mirror the nn.Module).
    embedding = jax.random.normal(k_emb, (V_OUT, D_MODEL), jnp.float32)
    u = jax.random.normal(k_u, (FACTOR_DIM, FACTOR_DIM), jnp.float32)
    v = jax.random.normal(k_v, (FACTOR_DIM, FACTOR_DIM), jnp.float32)
    w_out = jax.random.normal(k_w, (V_OUT, D_MODEL), jnp.float32) * (1.0 / jnp.sqrt(D_MODEL))
    b_out = jax.random.normal(k_b, (V_OUT,), jnp.float32) * 0.01

    tokens = jax.random.randint(k_tok, (BATCH, SEQ_LEN), 0, V_OUT, dtype=jnp.int32)

    logits, kron_masked = kron_model_induction_forward(
        tokens, embedding, u, v, w_out, b_out)
    jax.block_until_ready((logits, kron_masked))

    ref_logits, ref_kron = _reference_forward(
        tokens, embedding, u, v, w_out, b_out)

    assert logits.shape == (BATCH, SEQ_LEN, V_OUT)
    assert kron_masked.shape == (SEQ_LEN, SEQ_LEN)
    assert jnp.allclose(logits, ref_logits, atol=1e-4, rtol=1e-4)
    assert jnp.allclose(kron_masked, ref_kron, atol=1e-5, rtol=1e-5)

    print("KERNEL_OK")
</pallas_src>

<mosaic_0001>
module attributes {stable_mosaic.version = 11 : i64} {
  func.func @_kron_induction_kernel(%arg0: i32, %arg1: memref<1x64x8xf32, #tpu.memory_space<vmem>>, %arg2: memref<64x64xf32, #tpu.memory_space<vmem>>, %arg3: memref<128x128xf32, #tpu.memory_space<vmem>>, %arg4: memref<8x128xf32, #tpu.memory_space<vmem>>, %arg5: memref<1x128xf32, #tpu.memory_space<vmem>>, %arg6: memref<1x64x128xf32, #tpu.memory_space<vmem>>) attributes {dimension_semantics = [#tpu.dimension_semantics<parallel>], iteration_bounds = array<i64: 1>, scalar_prefetch = 0 : i64, scratch_operands = 0 : i64, tpu.core_type = #tpu.core_type<tc>, window_params = [{transform_indices = @transform_0, window_bounds = array<i64: 1, 64, 8>}, {pipeline_mode = #tpu.pipeline_mode<synchronous>, transform_indices = @transform_1, window_bounds = array<i64: 64, 64>}, {pipeline_mode = #tpu.pipeline_mode<synchronous>, transform_indices = @transform_2, window_bounds = array<i64: 128, 128>}, {pipeline_mode = #tpu.pipeline_mode<synchronous>, transform_indices = @transform_3, window_bounds = array<i64: 8, 128>}, {pipeline_mode = #tpu.pipeline_mode<synchronous>, transform_indices = @transform_4, window_bounds = array<i64: 1, 128>}, {transform_indices = @transform_5, window_bounds = array<i64: 1, 64, 128>}]} {
    %c0 = arith.constant 0 : index
    %c0_0 = arith.constant 0 : index
    %c0_1 = arith.constant 0 : index
    %0 = vector.load %arg1[%c0, %c0_0, %c0_1] : memref<1x64x8xf32, #tpu.memory_space<vmem>>, vector<1x64x8xf32>
    %1 = vector.shape_cast %0 : vector<1x64x8xf32> to vector<64x8xf32>
    %c0_2 = arith.constant 0 : index
    %c0_3 = arith.constant 0 : index
    %2 = vector.load %arg4[%c0_2, %c0_3] : memref<8x128xf32, #tpu.memory_space<vmem>>, vector<8x128xf32>
    %cst = arith.constant dense<0.000000e+00> : vector<64x128xf32>
    %3 = tpu.matmul %1, %2, %cst {dimension_numbers = #tpu.dot_dimension_numbers<[1], [0], [0], [1], [0, 0, 1, 1], [], []>} : vector<64x8xf32>, vector<8x128xf32>, vector<64x128xf32> -> vector<64x128xf32>
    %4 = tpu.iota {dimensions = array<i32: 1>} : vector<64x128xi32>
    %5 = arith.sitofp %4 : vector<64x128xi32> to vector<64x128xf32>
    %6 = arith.subf %5, %3 : vector<64x128xf32>
    %7 = math.absf %6 : vector<64x128xf32>
    %cst_4 = arith.constant 5.000000e-01 : f32
    %8 = vector.broadcast %cst_4 : f32 to vector<64x128xf32>
    %9 = arith.cmpf olt, %7, %8 : vector<64x128xf32>
    %cst_5 = arith.constant 1.000000e+00 : f32
    %cst_6 = arith.constant 0.000000e+00 : f32
    %10 = vector.broadcast %cst_5 : f32 to vector<64x128xf32>
    %11 = vector.broadcast %cst_6 : f32 to vector<64x128xf32>
    %12 = arith.select %9, %10, %11 : vector<64x128xi1>, vector<64x128xf32>
    %c0_7 = arith.constant 0 : index
    %c0_8 = arith.constant 0 : index
    %13 = vector.load %arg3[%c0_7, %c0_8] : memref<128x128xf32, #tpu.memory_space<vmem>>, vector<128x128xf32>
    %cst_9 = arith.constant dense<0.000000e+00> : vector<64x128xf32>
    %14 = tpu.matmul %12, %13, %cst_9 {dimension_numbers = #tpu.dot_dimension_numbers<[1], [0], [0], [1], [0, 0, 1, 1], [], []>} : vector<64x128xf32>, vector<128x128xf32>, vector<64x128xf32> -> vector<64x128xf32>
    %c0_10 = arith.constant 0 : index
    %c0_11 = arith.constant 0 : index
    %15 = vector.load %arg2[%c0_10, %c0_11] : memref<64x64xf32, #tpu.memory_space<vmem>>, vector<64x64xf32>
    %cst_12 = arith.constant dense<0.000000e+00> : vector<64x128xf32>
    %16 = tpu.matmul %15, %14, %cst_12 {dimension_numbers = #tpu.dot_dimension_numbers<[0], [0], [1], [1], [0, 1, 1, 1], [], []>} : vector<64x64xf32>, vector<64x128xf32>, vector<64x128xf32> -> vector<64x128xf32>
    %c0_13 = arith.constant 0 : index
    %c0_14 = arith.constant 0 : index
    %17 = vector.load %arg5[%c0_13, %c0_14] : memref<1x128xf32, #tpu.memory_space<vmem>>, vector<1x128xf32>
    %18 = vector.broadcast %17 : vector<1x128xf32> to vector<64x128xf32>
    %19 = arith.addf %16, %18 : vector<64x128xf32>
    %c0_15 = arith.constant 0 : index
    %c0_16 = arith.constant 0 : index
    %c0_17 = arith.constant 0 : index
    %20 = vector.load %arg6[%c0_15, %c0_16, %c0_17] : memref<1x64x128xf32, #tpu.memory_space<vmem>>, vector<1x64x128xf32>
    %21 = vector.shape_cast %20 : vector<1x64x128xf32> to vector<64x128xf32>
    %22 = vector.shape_cast %19 : vector<64x128xf32> to vector<1x64x128xf32>
    tpu.vector_store %arg6[%c0_15, %c0_16, %c0_17], %22 {strides = array<i32>} : memref<1x64x128xf32, #tpu.memory_space<vmem>>, vector<1x64x128xf32>,
    return
  }
  func.func @transform_0(%arg0: i32) -> (i32, i32, i32) {
    %c0_i32 = arith.constant 0 : i32
    %c0_i32_0 = arith.constant 0 : i32
    %c0_i32_1 = arith.constant 0 : i32
    return %arg0, %c0_i32, %c0_i32_0 : i32, i32, i32
  }
  func.func @transform_1(%arg0: i32) -> (i32, i32) {
    %c0_i32 = arith.constant 0 : i32
    %c0_i32_0 = arith.constant 0 : i32
    %c0_i32_1 = arith.constant 0 : i32
    return %c0_i32, %c0_i32_0 : i32, i32
  }
  func.func @transform_2(%arg0: i32) -> (i32, i32) {
    %c0_i32 = arith.constant 0 : i32
    %c0_i32_0 = arith.constant 0 : i32
    %c0_i32_1 = arith.constant 0 : i32
    return %c0_i32, %c0_i32_0 : i32, i32
  }
  func.func @transform_3(%arg0: i32) -> (i32, i32) {
    %c0_i32 = arith.constant 0 : i32
    %c0_i32_0 = arith.constant 0 : i32
    %c0_i32_1 = arith.constant 0 : i32
    return %c0_i32, %c0_i32_0 : i32, i32
  }
  func.func @transform_4(%arg0: i32) -> (i32, i32) {
    %c0_i32 = arith.constant 0 : i32
    %c0_i32_0 = arith.constant 0 : i32
    %c0_i32_1 = arith.constant 0 : i32
    return %c0_i32, %c0_i32_0 : i32, i32
  }
  func.func @transform_5(%arg0: i32) -> (i32, i32, i32) {
    %c0_i32 = arith.constant 0 : i32
    %c0_i32_0 = arith.constant 0 : i32
    %c0_i32_1 = arith.constant 0 : i32
    return %arg0, %c0_i32, %c0_i32_0 : i32, i32, i32
  }
}

</mosaic_0001>

<bundles_post_ra>
// kernel: tpu_custom_call.1
= control target key start
LH: loop header
LB: loop body
LE: loop exit
PB: predicated region body
PF: predicated region fallthrough
CT: control target
= control target key end

     0   :  { %10 = vsyncpa [#allocation3], 0  ;;  %s929_s0 = inlined_call_operand.vmem [shape: f32[1,64,8], index: 0, kind: input, shape index: {}]   ;;  %s930_s1 = inlined_call_operand.vmem [shape: f32[64,64], index: 1, kind: input, shape index: {}]   ;;  %s931_s2 = inlined_call_operand.hbm [shape: f32[128,128], index: 2, kind: input, shape index: {}]   ;;  %s932_s3 = inlined_call_operand.vmem [shape: f32[8,128], index: 3, kind: input, shape index: {}]   ;;  %s933_s4 = inlined_call_operand.vmem [shape: f32[1,128], index: 4, kind: input, shape index: {}]   ;;  %s934_s5 = inlined_call_operand.hbm [shape: f32[1,64,128], index: 5, kind: output, shape index: {}]  }
   0x1   :  { %11 = vsyncpa [#allocation4], 0  ;;  %s794_s18 = smov [#allocation2]   ;;  %s746_s22 = scalar_lea.hbm %s931_s2, 2048 }
   0x2   :  { %s21_s19 = sshll.u32 %s794_s18, 4  ;;  %p747_p0 = scmp.ne.s32.totalorder %s931_s2, %s746_s22  ;;  %s22_s19 = int_to_ptr.vmem [resolvable:$true] %s21_s19 }
   0x3   :  { %p750_p1 = scmp.lt.u32.totalorder %s746_s22, %s931_s2 }
   0x5   :  { %p752_p2 = pnand %p750_p1, %p747_p0 }
   0x7   :  { %755 = shalt.err (!%p752_p2)
}
   0x8   :  { %s756_s27 = scalar_lea.vmem %s22_s19, 2048  ;;  %p761_p4 = scmp.lt.s32.totalorder %s22_s19, %s22_s19 }
   0x9   :  { %p757_p3 = scmp.ne.s32.totalorder %s22_s19, %s756_s27  ;;  %p762_p5 = scmp.lt.s32.totalorder %s756_s27, %s756_s27 }
   0xb   :  { %p763_p6 = por %p762_p5, %p761_p4 }
   0xd   :  { %p764_p7 = pnand %p763_p6, %p757_p3 }
   0xf   :  { %767 = shalt.err (!%p764_p7)
}
  0x10   :  { %s795_s28 = smov 128   ;;  %s796_s29 = smov 8  }
  0x11   :  { %27 = dma.hbm_to_vmem [thread:$0]  %s931_s2, 2048, %s22_s19, [#allocation3], %s795_s28, %s795_s28, %s796_s29  }
  0x12   :  { %790 = dma.done.wait [#allocation3], 2048  }
  0x13   :  { %791 = vsyncadd [#allocation3], 4294965248  ;;  %vm44_vm0 = vcmask 64512   ;;  %v43_v0 = vld [vmem:[%s932_s3] sm:$0xff]  ;;  %v36_v2 = vld [vmem:[%s929_s0 + $0x8] sm:$0xff]  ;;  %v174_v41 = vlaneseq  ;;  %v797_v55 = vmov 1.0  }
  0x14   :  { %v35_v1 = vld [vmem:[%s929_s0] sm:$0xff]  ;;  %606 = vmatprep.subr.mxu0 %v43_v0  ;;  %v37_v3 = vld [vmem:[%s929_s0 + $0x10] sm:$0xff]  ;;  %v210_v5 = vld [vmem:[#allocation2 + $0x8] sm:$0xff]  ;;  %vm377_vm9 = vcmask 523264   ;;  %s798_s14 = smov [#allocation5]  }
  0x15   :  { %608 = vmatprep.mubr.msk.f32.mxu0 %vm44_vm0, %v35_v1  ;;  %607 = vmatpush3.msra.mxu0 %v43_v0  ;;  %v209_v4 = vld [vmem:[#allocation2] sm:$0xff]  ;;  %v211_v6 = vld [vmem:[#allocation2 + $0x10] sm:$0xff]  ;;  %v38_v7 = vld [vmem:[%s929_s0 + $0x18] sm:$0xff]  ;;  %v175_v42 = vand.u32 127, %v174_v41  ;;  %s520_s15 = sshll.u32 %s798_s14, 4  ;;  %s521_s15 = int_to_ptr.vmem [resolvable:$true] %s520_s15 }
  0x16   :  { %609 = vmatmul.mubr.msk.f32.vlgmr.msra.gmra.mrb[0].mxu0 %vm44_vm0, %v36_v2  ;;  %v692_v8 = vpack.c.bf16 %v210_v5, %v209_v4  ;;  %v212_v9 = vld [vmem:[#allocation2 + $0x18] sm:$0xff]  ;;  %v39_v10 = vld [vmem:[%s929_s0 + $0x20] sm:$0xff]  ;;  %v214_v13 = vld [vmem:[#allocation2 + $0x28] sm:$0xff]  ;;  %p773_p9 = scmp.lt.s32.totalorder %s521_s15, %s521_s15 }
  0x17   :  { %611 = vmatprep.mubr.msk.f32.mxu0 %vm44_vm0, %v37_v3  ;;  %v696_v11 = vpack.c.bf16 %v212_v9, %v211_v6  ;;  %v213_v12 = vld [vmem:[#allocation2 + $0x20] sm:$0xff]  ;;  %v40_v14 = vld [vmem:[%s929_s0 + $0x28] sm:$0xff]  ;;  %v41_v16 = vld [vmem:[%s929_s0 + $0x30] sm:$0xff]  ;;  %v176_v43 = vcvt.s32.f32 %v175_v42 }
  0x18   :  { %693 = vmatprep.subr.bf16.mxu1 %v692_v8  ;;  %v700_v15 = vpack.c.bf16 %v214_v13, %v213_v12  ;;  %v215_v17 = vld [vmem:[#allocation2 + $0x30] sm:$0xff]  ;;  %v216_v18 = vld [vmem:[#allocation2 + $0x38] sm:$0xff]  ;;  %v217_v21 = vld [vmem:[#allocation2 + $0x40] sm:$0xff] }
  0x19   :  { %695 = vmatpush3.bf16.msra.mxu1 %v692_v8  ;;  %v42_v19 = vld [vmem:[%s929_s0 + $0x38] sm:$0xff]  ;;  %v704_v20 = vpack.c.bf16 %v216_v18, %v215_v17  ;;  %v218_v22 = vld [vmem:[#allocation2 + $0x48] sm:$0xff]  ;;  %v219_v24 = vld [vmem:[#allocation2 + $0x50] sm:$0xff] }
  0x1a   :  { %612 = vmatmul.mubr.msk.f32.gmra.mrb[2].mxu0 %vm44_vm0, %v38_v7  ;;  %697 = vmatprep.subr.bf16.mxu1 %v696_v11  ;;  %v708_v23 = vpack.c.bf16 %v218_v22, %v217_v21  ;;  %v220_v25 = vld [vmem:[#allocation2 + $0x58] sm:$0xff]  ;;  %v221_v27 = vld [vmem:[#allocation2 + $0x60] sm:$0xff]  ;;  %v222_v28 = vld [vmem:[#allocation2 + $0x68] sm:$0xff] }
  0x1b   :  { %614 = vmatprep.mubr.msk.f32.mxu0 %vm44_vm0, %v39_v10  ;;  %v712_v26 = vpack.c.bf16 %v220_v25, %v219_v24  ;;  %v716_v29 = vpack.c.bf16 %v222_v28, %v221_v27  ;;  %v223_v30 = vld [vmem:[#allocation2 + $0x70] sm:$0xff]  ;;  %v224_v31 = vld [vmem:[#allocation2 + $0x78] sm:$0xff]  ;;  %v330_v33 = vld [vmem:[%s930_s1] sm:$0xff] }
  0x1c   :  { %v720_v32 = vpack.c.bf16 %v224_v31, %v223_v30  ;;  %345 = vxpose.xlu0.b32.start [1/8] (short) (narrow) %v330_v33, 64  ;;  %v331_v34 = vld [vmem:[%s930_s1 + $0x8] sm:$0xff]  ;;  %v332_v35 = vld [vmem:[%s930_s1 + $0x10] sm:$0xff]  ;;  %v333_v36 = vld [vmem:[%s930_s1 + $0x18] sm:$0xff] }
  0x1d   :  { %699 = vmatpush3.bf16.msra.mxu1 %v696_v11  ;;  %v334_v37 = vld [vmem:[%s930_s1 + $0x20] sm:$0xff]  ;;  %v335_v38 = vld [vmem:[%s930_s1 + $0x28] sm:$0xff]  ;;  %v336_v39 = vld [vmem:[%s930_s1 + $0x30] sm:$0xff] }
  0x1e   :  { %615 = vmatmul.mubr.msk.f32.gmra.mrb[4].mxu0 %vm44_vm0, %v40_v14  ;;  %701 = vmatprep.subr.bf16.mxu1 %v700_v15  ;;  %v337_v40 = vld [vmem:[%s930_s1 + $0x38] sm:$0xff]  ;;  %v548_v25 = vld [vmem:[%s933_s4] ss:$0 sm:$0xff]  ;;  %s768_s4 = scalar_lea.vmem %s521_s15, 1024 }
  0x1f   :  { %617 = vmatprep.mubr.msk.f32.mxu0 %vm44_vm0, %v41_v16  ;;  %p769_p8 = scmp.ne.s32.totalorder %s521_s15, %s768_s4  ;;  %p774_p10 = scmp.lt.s32.totalorder %s768_s4, %s768_s4 }
  0x20   :  { %346 = vxpose.xlu0.b32.cont [2/8] (short) (narrow) %v331_v34, 64 }
  0x21   :  { %703 = vmatpush3.bf16.msra.mxu1 %v700_v15  ;;  %p775_p11 = por %p774_p10, %p773_p9 }
  0x22   :  { %618 = vmatmul.mubr.msk.f32.gmra.mrb[6].mxu0 %vm44_vm0, %v42_v19  ;;  %705 = vmatprep.subr.bf16.mxu1 %v704_v20 }
  0x23   :  { %p776_p12 = pnand %p775_p11, %p769_p8 }
  0x24   :  { %347 = vxpose.xlu0.b32.cont [3/8] (short) (narrow) %v332_v35, 64 }
  0x25   :  { %707 = vmatpush3.bf16.msra.mxu1 %v704_v20 }
  0x26   :  { %709 = vmatprep.subr.bf16.mxu1 %v708_v23 }
  0x28   :  { %348 = vxpose.xlu0.b32.cont [4/8] (short) (narrow) %v333_v36, 64 }
  0x29   :  { %711 = vmatpush3.bf16.msra.mxu1 %v708_v23 }
  0x2a   :  { %713 = vmatprep.subr.bf16.mxu1 %v712_v26 }
  0x2c   :  { %349 = vxpose.xlu0.b32.cont [5/8] (short) (narrow) %v334_v37, 64 }
  0x2d   :  { %715 = vmatpush3.bf16.msra.mxu1 %v712_v26 }
  0x2e   :  { %717 = vmatprep.subr.bf16.mxu1 %v716_v29 }
  0x30   :  { %350 = vxpose.xlu0.b32.cont [6/8] (short) (narrow) %v335_v38, 64 }
  0x31   :  { %719 = vmatpush3.bf16.msra.mxu1 %v716_v29 }
  0x32   :  { %721 = vmatprep.subr.bf16.mxu1 %v720_v32 }
  0x34   :  { %351 = vxpose.xlu0.b32.cont [7/8] (short) (narrow) %v336_v39, 64 }
  0x35   :  { %723 = vmatpush3.bf16.msra.mxu1 %v720_v32 }
  0x38   :  { %352 = vxpose.xlu0.b32.end [8/8] (short) (narrow) %v337_v40, 64 }
  0x9c   :  { %v361_v5 = vpop.trf.xlu0 }
  0x9d   :  { %680 = vmatprep.mubr.msk.f32.mxu0 %vm377_vm9, %v361_v5 }
  0xa0   :  { %v362_v6 = vpop.trf.xlu0 }
  0xa4   :  { %v363_v7 = vpop.trf.xlu0 }
  0xa8   :  { %v364_v13 = vpop.trf.xlu0 }
  0xac   :  { %v365_v18 = vpop.trf.xlu0 }
  0xb0   :  { %v366_v22 = vpop.trf.xlu0 }
  0xb4   :  { %v367_v23 = vpop.trf.xlu0 }
  0xb8   :  { %v368_v24 = vpop.trf.xlu0 }
  0xe9   :  { %v610_v44 = vpop.f32.mrb[0].mxu0 }
  0xea   :  { %v178_v45 = vsub.f32 %v176_v43, %v610_v44  ;;  %v135_v46 = vpop.f32.mrb[1].mxu0 }
  0xeb   :  { %v177_v47 = vsub.f32 %v176_v43, %v135_v46 }
  0xec   :  { %v186_v48 = vand.u32 2147483647, %v178_v45 }
  0xed   :  { %v613_v49 = vpop.f32.mrb[2].mxu0  ;;  %v185_v50 = vand.u32 2147483647, %v177_v47 }
  0xee   :  { %v180_v51 = vsub.f32 %v176_v43, %v613_v49  ;;  %v145_v52 = vpop.f32.mrb[3].mxu0  ;;  %vm194_vm2 = vcmp.lt.f32.partialorder %v186_v48, 0.5 }
  0xef   :  { %v179_v53 = vsub.f32 %v176_v43, %v145_v52  ;;  %vm193_vm1 = vcmp.lt.f32.partialorder %v185_v50, 0.5 }
  0xf0   :  { %v188_v54 = vand.u32 2147483647, %v180_v51  ;;  %652 = vmatprep.mubr.msk.f32.mxu1 %vm193_vm1, %v797_v55 }
  0xf1   :  { %v187_v56 = vand.u32 2147483647, %v179_v53  ;;  %v616_v57 = vpop.f32.mrb[4].mxu0  ;;  %653 = vmatmul.mubr.msk.f32.vlgmr.msra.gmra.mrb[0].mxu1 %vm194_vm2, %v797_v55 }
  0xf2   :  { %v182_v58 = vsub.f32 %v176_v43, %v616_v57  ;;  %v155_v59 = vpop.f32.mrb[5].mxu0  ;;  %vm196_vm4 = vcmp.lt.f32.partialorder %v188_v54, 0.5 }
  0xf3   :  { %vm195_vm3 = vcmp.lt.f32.partialorder %v187_v56, 0.5  ;;  %v181_v60 = vsub.f32 %v176_v43, %v155_v59 }
  0xf4   :  { %v190_v61 = vand.u32 2147483647, %v182_v58  ;;  %655 = vmatprep.mubr.msk.f32.mxu1 %vm195_vm3, %v797_v55 }
  0xf5   :  { %v189_v62 = vand.u32 2147483647, %v181_v60  ;;  %v619_v63 = vpop.f32.mrb[6].mxu0  ;;  %656 = vmatmul.mubr.msk.f32.gmra.mrb[2].mxu1 %vm196_vm4, %v797_v55 }
  0xf6   :  { %v184_v0 = vsub.f32 %v176_v43, %v619_v63  ;;  %v165_v1 = vpop.f32.mrb[7].mxu0  ;;  %vm198_vm6 = vcmp.lt.f32.partialorder %v190_v61, 0.5 }
  0xf7   :  { %vm197_vm5 = vcmp.lt.f32.partialorder %v189_v62, 0.5  ;;  %v183_v2 = vsub.f32 %v176_v43, %v165_v1 }
  0xf8   :  { %v192_v3 = vand.u32 2147483647, %v184_v0  ;;  %658 = vmatprep.mubr.msk.f32.mxu1 %vm197_vm5, %v797_v55 }
  0xf9   :  { %v191_v4 = vand.u32 2147483647, %v183_v2  ;;  %659 = vmatmul.mubr.msk.f32.gmra.mrb[4].mxu1 %vm198_vm6, %v797_v55 }
  0xfa   :  { %vm200_vm8 = vcmp.lt.f32.partialorder %v192_v3, 0.5 }
  0xfb   :  { %vm199_vm7 = vcmp.lt.f32.partialorder %v191_v4, 0.5 }
  0xfc   :  { %661 = vmatprep.mubr.msk.f32.mxu1 %vm199_vm7, %v797_v55 }
  0xfd   :  { %662 = vmatmul.mubr.msk.f32.gmra.mrb[6].mxu1 %vm200_vm8, %v797_v55 }
 0x1c4   :  { %v654_v8 = vpop.f32.mrb[0].mxu1 }
 0x1c5   :  { %v291_v9 = vpop.f32.mrb[1].mxu1 }
 0x1c6   :  { %v724_v10 = vpack.c.bf16 %v654_v8, %v291_v9 }
 0x1c8   :  { %v657_v11 = vpop.f32.mrb[2].mxu1  ;;  %725 = vmatprep.subr.bf16.mxu0 %v724_v10 }
 0x1c9   :  { %v301_v12 = vpop.f32.mrb[3].mxu1  ;;  %727 = vmatpush3.bf16.msra.mxu0 %v724_v10 }
 0x1ca   :  { %v728_v14 = vpack.c.bf16 %v657_v11, %v301_v12 }
 0x1cc   :  { %v660_v15 = vpop.f32.mrb[4].mxu1  ;;  %729 = vmatprep.subr.bf16.mxu0 %v728_v14 }
 0x1cd   :  { %v311_v16 = vpop.f32.mrb[5].mxu1  ;;  %731 = vmatpush3.bf16.msra.mxu0 %v728_v14 }
 0x1ce   :  { %v732_v17 = vpack.c.bf16 %v660_v15, %v311_v16 }
 0x1d0   :  { %v663_v19 = vpop.f32.mrb[6].mxu1  ;;  %733 = vmatprep.subr.bf16.mxu0 %v732_v17 }
 0x1d1   :  { %v321_v20 = vpop.f32.mrb[7].mxu1  ;;  %735 = vmatpush3.bf16.msra.mxu0 %v732_v17 }
 0x1d2   :  { %v736_v21 = vpack.c.bf16 %v663_v19, %v321_v20 }
 0x1d4   :  { %737 = vmatprep.subr.bf16.mxu0 %v736_v21 }
 0x1d5   :  { %739 = vmatpush3.bf16.msra.mxu0 %v736_v21 }
 0x1d8   :  { %681 = vmatmul.mubr.msk.f32.vlgmr.msra.gmra.mrb[8].mxu0 %vm377_vm9, %v362_v6 }
 0x1d9   :  { %683 = vmatprep.mubr.msk.f32.mxu0 %vm377_vm9, %v363_v7 }
 0x1dc   :  { %684 = vmatmul.mubr.msk.f32.gmra.mrb[10].mxu0 %vm377_vm9, %v364_v13 }
 0x1dd   :  { %686 = vmatprep.mubr.msk.f32.mxu0 %vm377_vm9, %v365_v18 }
 0x1e0   :  { %687 = vmatmul.mubr.msk.f32.gmra.mrb[12].mxu0 %vm377_vm9, %v366_v22 }
 0x1e1   :  { %689 = vmatprep.mubr.msk.f32.mxu0 %vm377_vm9, %v367_v23 }
 0x1e4   :  { %690 = vmatmul.mubr.msk.f32.gmra.mrb[14].mxu0 %vm377_vm9, %v368_v24 }
 0x2ab   :  { %v682_v26 = vpop.f32.mrb[8].mxu0 }
 0x2ac   :  { %v474_v27 = vadd.f32 %v682_v26, %v548_v25  ;;  %v468_v28 = vpop.f32.mrb[9].mxu0 }
 0x2ad   :  { %v469_v29 = vadd.f32 %v548_v25, %v468_v28 }
 0x2ae   :  { %508 = vst [vmem:[#allocation5 + $0x8] sm:$0xff] %v474_v27 }
 0x2af   :  { %507 = vst [vmem:[#allocation5] sm:$0xff] %v469_v29  ;;  %v685_v30 = vpop.f32.mrb[10].mxu0 }
 0x2b0   :  { %v484_v31 = vadd.f32 %v685_v30, %v548_v25  ;;  %v478_v32 = vpop.f32.mrb[11].mxu0 }
 0x2b1   :  { %v479_v33 = vadd.f32 %v548_v25, %v478_v32 }
 0x2b2   :  { %510 = vst [vmem:[#allocation5 + $0x18] sm:$0xff] %v484_v31 }
 0x2b3   :  { %509 = vst [vmem:[#allocation5 + $0x10] sm:$0xff] %v479_v33  ;;  %v688_v34 = vpop.f32.mrb[12].mxu0 }
 0x2b4   :  { %v494_v35 = vadd.f32 %v688_v34, %v548_v25  ;;  %v488_v36 = vpop.f32.mrb[13].mxu0 }
 0x2b5   :  { %v489_v37 = vadd.f32 %v548_v25, %v488_v36 }
 0x2b6   :  { %512 = vst [vmem:[#allocation5 + $0x28] sm:$0xff] %v494_v35 }
 0x2b7   :  { %511 = vst [vmem:[#allocation5 + $0x20] sm:$0xff] %v489_v37  ;;  %v691_v38 = vpop.f32.mrb[14].mxu0 }
 0x2b8   :  { %v504_v39 = vadd.f32 %v691_v38, %v548_v25  ;;  %v498_v40 = vpop.f32.mrb[15].mxu0 }
 0x2b9   :  { %v499_v41 = vadd.f32 %v548_v25, %v498_v40 }
 0x2ba   :  { %514 = vst [vmem:[#allocation5 + $0x38] sm:$0xff] %v504_v39 }
 0x2bb   :  { %513 = vst [vmem:[#allocation5 + $0x30] sm:$0xff] %v499_v41 }
 0x2bc   :  { %779 = shalt.err (!%p776_p12)
}
 0x2bd   :  { %s780_s18 = scalar_lea.hbm %s934_s5, 1024 }
 0x2be   :  { %p781_p13 = scmp.ne.s32.totalorder %s934_s5, %s780_s18  ;;  %p784_p0 = scmp.lt.u32.totalorder %s780_s18, %s934_s5 }
 0x2c0   :  { %p786_p1 = pnand %p784_p0, %p781_p13 }
 0x2c2   :  { %789 = shalt.err (!%p786_p1)
}
 0x2c3   :  { %526 = dma.vmem_to_hbm [thread:$0]  %s521_s15, 1024, %s934_s5, [#allocation4], %s795_s28, %s795_s28, %s796_s29  }
 0x2c4   :  { %792 = dma.done.wait [#allocation4], 1024  }
 0x2c5   :  { %793 = vsyncadd [#allocation4], 4294966272 }
 0x2c6   :  { %530 = vsyncpa [#allocation3], 1 }
 0x2c7   :  { %531 = vsyncpa [#allocation4], 1 }

</bundles_post_ra>
